<compile_context>
chip_gen: v7x
topology: tpu7x:2x2x1
jax: 0.10.0
libtpu: 0.0.40
codegen_flags: <defaults>
</compile_context>

<pallas_src>
import functools

import jax
import jax.numpy as jnp
from jax import lax
from jax.experimental import pallas as pl
from jax.experimental.pallas import tpu as pltpu


def _in_proj_qk_kernel(x_ref, wq_ref, wk_ref, bq_ref, bk_ref,
                       q_ref, k_ref, qacc_ref, kacc_ref, *, scaling):
    """One (tm x tk) step of X @ W^T, split into q/k halves."""
    kk = pl.program_id(1)

    @pl.when(kk == 0)
    def _init():
        qacc_ref[...] = jnp.zeros_like(qacc_ref)
        kacc_ref[...] = jnp.zeros_like(kacc_ref)

    x = x_ref[...]
    # Contract last dim of x (tm, tk) with last dim of w (E, tk): x @ w.T on
    # the MXU with no transposed weight copy in HBM.
    dn = (((1,), (1,)), ((), ()))
    qacc_ref[...] += lax.dot_general(x, wq_ref[...], dn,
                                     preferred_element_type=jnp.float32)
    kacc_ref[...] += lax.dot_general(x, wk_ref[...], dn,
                                     preferred_element_type=jnp.float32)

    # Bias add + q scaling only once, on the finished f32 accumulators.
    @pl.when(kk == pl.num_programs(1) - 1)
    def _epilogue():
        q_ref[...] = ((qacc_ref[...] + bq_ref[...]) * scaling).astype(q_ref.dtype)
        k_ref[...] = (kacc_ref[...] + bk_ref[...]).astype(k_ref.dtype)


def _pick_tile(dim, candidates):
    """Largest candidate tile that evenly divides `dim`, else full extent."""
    for c in candidates:
        if c <= dim and dim % c == 0:
            return c
    return dim  # full extent is always a legal block shape


def scaled_dot_product_attention_fwd(query, in_proj_weight, in_proj_bias):
    """query: (tgt_len, bsz, embed_dim) -> (q, k), each (tgt_len, bsz, embed_dim)."""
    tgt_len, bsz, embed_dim = query.shape
    E = embed_dim
    assert in_proj_weight.shape == (2 * E, E)
    assert in_proj_bias.shape == (2 * E,)

    M = tgt_len * bsz
    K = E

    x2d = query.reshape(M, K)               # contiguous -> metadata-only reshape
    bq = in_proj_bias[:E].reshape(1, E)     # tiny (E floats each)
    bk = in_proj_bias[E:].reshape(1, E)
    scaling = float(E) ** -0.5

    # Row tiles in multiples of 8 sublanes, contraction tiles in multiples of
    # 128 lanes; fall back to full extent when the dimension is small.  Sized
    # to fit comfortably inside v7x's smaller VMEM while staying big enough to
    # sit near the HBM roofline on v5e/v6e.
    tm = _pick_tile(M, (256, 128, 64, 32, 16, 8))
    tk = _pick_tile(K, (512, 256, 128))
    grid = (M // tm, K // tk)

    if E % 8 == 0:
        # Zero-copy split: pass the same weight buffer twice; block index 0 / 1
        # along the 2E axis selects the q-half / k-half rows directly.
        w_q_arg, w_k_arg = in_proj_weight, in_proj_weight
        wq_spec = pl.BlockSpec((E, tk), lambda i, kk: (0, kk))
        wk_spec = pl.BlockSpec((E, tk), lambda i, kk: (1, kk))
    else:
        # Rare fallback (E not sublane-aligned): slice once in the wrapper.
        w_q_arg, w_k_arg = in_proj_weight[:E], in_proj_weight[E:]
        wq_spec = pl.BlockSpec((E, tk), lambda i, kk: (0, kk))
        wk_spec = pl.BlockSpec((E, tk), lambda i, kk: (0, kk))

    kernel = functools.partial(_in_proj_qk_kernel, scaling=scaling)

    q2d, k2d = pl.pallas_call(
        kernel,
        out_shape=(jax.ShapeDtypeStruct((M, E), query.dtype),
                   jax.ShapeDtypeStruct((M, E), query.dtype)),
        grid=grid,
        in_specs=[
            pl.BlockSpec((tm, tk), lambda i, kk: (i, kk)),   # activations
            wq_spec,                                         # W rows [0, E)
            wk_spec,                                         # W rows [E, 2E)
            pl.BlockSpec((1, E), lambda i, kk: (0, 0)),      # bias, q-half
            pl.BlockSpec((1, E), lambda i, kk: (0, 0)),      # bias, k-half
        ],
        out_specs=(
            pl.BlockSpec((tm, E), lambda i, kk: (i, 0)),     # q
            pl.BlockSpec((tm, E), lambda i, kk: (i, 0)),     # k
        ),
        scratch_shapes=[pltpu.VMEM((tm, E), jnp.float32),
                        pltpu.VMEM((tm, E), jnp.float32)],
        compiler_params=pltpu.CompilerParams(
            dimension_semantics=("parallel", "arbitrary"),
            vmem_limit_bytes=48 * 1024 * 1024),
    )(x2d, w_q_arg, w_k_arg, bq, bk)

    q = q2d.reshape(tgt_len, bsz, E)
    k = k2d.reshape(tgt_len, bsz, E)
    return q, k


def _reference_fwd(query, in_proj_weight, in_proj_bias):
    """Pure-JAX reference mirroring the PyTorch forward."""
    embed_dim = query.shape[-1]
    proj = jnp.einsum("tbe,ne->tbn", query, in_proj_weight,
                      precision=jax.lax.Precision.HIGHEST) + in_proj_bias
    q, k = jnp.split(proj, 2, axis=-1)
    return q * (embed_dim ** -0.5), k


if __name__ == "__main__":
    # Small but lane-aligned demo shapes (last dim 128 -> unmasked vst stores).
    tgt_len, bsz, embed_dim = 8, 4, 128

    key0 = jax.random.PRNGKey(0)
    k_q, k_k, k_w, k_b = jax.random.split(key0, 4)

    query = jax.random.normal(k_q, (tgt_len, bsz, embed_dim), jnp.float32)
    key_in = jax.random.normal(k_k, (tgt_len, bsz, embed_dim), jnp.float32)  # unused by forward

    # Xavier-uniform-style weight, small nonzero bias to exercise the bias add.
    fan_in, fan_out = embed_dim, 2 * embed_dim
    limit = (6.0 / (fan_in + fan_out)) ** 0.5
    in_proj_weight = jax.random.uniform(
        k_w, (2 * embed_dim, embed_dim), jnp.float32, -limit, limit)
    in_proj_bias = jax.random.normal(k_b, (2 * embed_dim,), jnp.float32) * 0.1

    q, k = scaled_dot_product_attention_fwd(query, in_proj_weight, in_proj_bias)
    jax.block_until_ready((q, k))

    q_ref, k_ref = _reference_fwd(query, in_proj_weight, in_proj_bias)
    assert q.shape == (tgt_len, bsz, embed_dim) and k.shape == (tgt_len, bsz, embed_dim)
    assert jnp.allclose(q, q_ref, atol=1e-4, rtol=1e-4)
    assert jnp.allclose(k, k_ref, atol=1e-4, rtol=1e-4)

    # TODO(synk): attn_dropout and the post-return bmm(q, k.T) are dead code in
    # the PyTorch forward and are intentionally not implemented.
    print("KERNEL_OK")
</pallas_src>

<mosaic_0001>
module attributes {stable_mosaic.version = 11 : i64} {
  func.func @_in_proj_qk_kernel(%arg0: i32, %arg1: i32, %arg2: memref<32x128xf32, #tpu.memory_space<vmem>>, %arg3: memref<128x128xf32, #tpu.memory_space<vmem>>, %arg4: memref<128x128xf32, #tpu.memory_space<vmem>>, %arg5: memref<1x128xf32, #tpu.memory_space<vmem>>, %arg6: memref<1x128xf32, #tpu.memory_space<vmem>>, %arg7: memref<32x128xf32, #tpu.memory_space<vmem>>, %arg8: memref<32x128xf32, #tpu.memory_space<vmem>>, %arg9: memref<32x128xf32, #tpu.memory_space<vmem>>, %arg10: memref<32x128xf32, #tpu.memory_space<vmem>>) attributes {dimension_semantics = [#tpu.dimension_semantics<parallel>, #tpu.dimension_semantics<arbitrary>], iteration_bounds = array<i64: 1, 1>, scalar_prefetch = 0 : i64, scratch_operands = 2 : i64, tpu.core_type = #tpu.core_type<tc>, window_params = [{transform_indices = @transform_0, window_bounds = array<i64: 32, 128>}, {transform_indices = @transform_1, window_bounds = array<i64: 128, 128>}, {transform_indices = @transform_2, window_bounds = array<i64: 128, 128>}, {pipeline_mode = #tpu.pipeline_mode<synchronous>, transform_indices = @transform_3, window_bounds = array<i64: 1, 128>}, {pipeline_mode = #tpu.pipeline_mode<synchronous>, transform_indices = @transform_4, window_bounds = array<i64: 1, 128>}, {transform_indices = @transform_5, window_bounds = array<i64: 32, 128>}, {transform_indices = @transform_6, window_bounds = array<i64: 32, 128>}]} {
    %c0_i32 = arith.constant 0 : i32
    %0 = arith.cmpi eq, %arg1, %c0_i32 : i32
    %1 = arith.extui %0 : i1 to i32
    %c0_i32_0 = arith.constant 0 : i32
    %2 = arith.cmpi ne, %1, %c0_i32_0 : i32
    scf.if %2 {
      %cst_17 = arith.constant 0.000000e+00 : f32
      %17 = vector.broadcast %cst_17 : f32 to vector<32x128xf32>
      %c0_18 = arith.constant 0 : index
      %c0_19 = arith.constant 0 : index
      %18 = vector.load %arg9[%c0_18, %c0_19] : memref<32x128xf32, #tpu.memory_space<vmem>>, vector<32x128xf32>
      tpu.vector_store %arg9[%c0_18, %c0_19], %17 {strides = array<i32>} : memref<32x128xf32, #tpu.memory_space<vmem>>, vector<32x128xf32>,
      %cst_20 = arith.constant 0.000000e+00 : f32
      %19 = vector.broadcast %cst_20 : f32 to vector<32x128xf32>
      %c0_21 = arith.constant 0 : index
      %c0_22 = arith.constant 0 : index
      %20 = vector.load %arg10[%c0_21, %c0_22] : memref<32x128xf32, #tpu.memory_space<vmem>>, vector<32x128xf32>
      tpu.vector_store %arg10[%c0_21, %c0_22], %19 {strides = array<i32>} : memref<32x128xf32, #tpu.memory_space<vmem>>, vector<32x128xf32>,
    } else {
    }
    %c0 = arith.constant 0 : index
    %c0_1 = arith.constant 0 : index
    %3 = vector.load %arg2[%c0, %c0_1] : memref<32x128xf32, #tpu.memory_space<vmem>>, vector<32x128xf32>
    %c0_2 = arith.constant 0 : index
    %c0_3 = arith.constant 0 : index
    %4 = vector.load %arg9[%c0_2, %c0_3] : memref<32x128xf32, #tpu.memory_space<vmem>>, vector<32x128xf32>
    %c0_4 = arith.constant 0 : index
    %c0_5 = arith.constant 0 : index
    %5 = vector.load %arg3[%c0_4, %c0_5] : memref<128x128xf32, #tpu.memory_space<vmem>>, vector<128x128xf32>
    %cst = arith.constant dense<0.000000e+00> : vector<32x128xf32>
    %6 = tpu.matmul %3, %5, %cst {dimension_numbers = #tpu.dot_dimension_numbers<[1], [1], [0], [0], [0, 0, 1, 0], [], []>} : vector<32x128xf32>, vector<128x128xf32>, vector<32x128xf32> -> vector<32x128xf32>
    %7 = arith.addf %4, %6 : vector<32x128xf32>
    %c0_6 = arith.constant 0 : index
    %c0_7 = arith.constant 0 : index
    %8 = vector.load %arg9[%c0_6, %c0_7] : memref<32x128xf32, #tpu.memory_space<vmem>>, vector<32x128xf32>
    tpu.vector_store %arg9[%c0_6, %c0_7], %7 {strides = array<i32>} : memref<32x128xf32, #tpu.memory_space<vmem>>, vector<32x128xf32>,
    %c0_8 = arith.constant 0 : index
    %c0_9 = arith.constant 0 : index
    %9 = vector.load %arg10[%c0_8, %c0_9] : memref<32x128xf32, #tpu.memory_space<vmem>>, vector<32x128xf32>
    %c0_10 = arith.constant 0 : index
    %c0_11 = arith.constant 0 : index
    %10 = vector.load %arg4[%c0_10, %c0_11] : memref<128x128xf32, #tpu.memory_space<vmem>>, vector<128x128xf32>
    %cst_12 = arith.constant dense<0.000000e+00> : vector<32x128xf32>
    %11 = tpu.matmul %3, %10, %cst_12 {dimension_numbers = #tpu.dot_dimension_numbers<[1], [1], [0], [0], [0, 0, 1, 0], [], []>} : vector<32x128xf32>, vector<128x128xf32>, vector<32x128xf32> -> vector<32x128xf32>
    %12 = arith.addf %9, %11 : vector<32x128xf32>
    %c0_13 = arith.constant 0 : index
    %c0_14 = arith.constant 0 : index
    %13 = vector.load %arg10[%c0_13, %c0_14] : memref<32x128xf32, #tpu.memory_space<vmem>>, vector<32x128xf32>
    tpu.vector_store %arg10[%c0_13, %c0_14], %12 {strides = array<i32>} : memref<32x128xf32, #tpu.memory_space<vmem>>, vector<32x128xf32>,
    %c0_i32_15 = arith.constant 0 : i32
    %14 = arith.cmpi eq, %arg1, %c0_i32_15 : i32
    %15 = arith.extui %14 : i1 to i32
    %c0_i32_16 = arith.constant 0 : i32
    %16 = arith.cmpi ne, %15, %c0_i32_16 : i32
    scf.if %16 {
      %c0_17 = arith.constant 0 : index
      %c0_18 = arith.constant 0 : index
      %17 = vector.load %arg9[%c0_17, %c0_18] : memref<32x128xf32, #tpu.memory_space<vmem>>, vector<32x128xf32>
      %c0_19 = arith.constant 0 : index
      %c0_20 = arith.constant 0 : index
      %18 = vector.load %arg5[%c0_19, %c0_20] : memref<1x128xf32, #tpu.memory_space<vmem>>, vector<1x128xf32>
      %19 = vector.broadcast %18 : vector<1x128xf32> to vector<32x128xf32>
      %20 = arith.addf %17, %19 : vector<32x128xf32>
      %cst_21 = arith.constant 0.0883883461 : f32
      %21 = vector.broadcast %cst_21 : f32 to vector<32x128xf32>
      %22 = arith.mulf %20, %21 : vector<32x128xf32>
      %c0_22 = arith.constant 0 : index
      %c0_23 = arith.constant 0 : index
      %23 = vector.load %arg7[%c0_22, %c0_23] : memref<32x128xf32, #tpu.memory_space<vmem>>, vector<32x128xf32>
      tpu.vector_store %arg7[%c0_22, %c0_23], %22 {strides = array<i32>} : memref<32x128xf32, #tpu.memory_space<vmem>>, vector<32x128xf32>,
      %c0_24 = arith.constant 0 : index
      %c0_25 = arith.constant 0 : index
      %24 = vector.load %arg10[%c0_24, %c0_25] : memref<32x128xf32, #tpu.memory_space<vmem>>, vector<32x128xf32>
      %c0_26 = arith.constant 0 : index
      %c0_27 = arith.constant 0 : index
      %25 = vector.load %arg6[%c0_26, %c0_27] : memref<1x128xf32, #tpu.memory_space<vmem>>, vector<1x128xf32>
      %26 = vector.broadcast %25 : vector<1x128xf32> to vector<32x128xf32>
      %27 = arith.addf %24, %26 : vector<32x128xf32>
      %c0_28 = arith.constant 0 : index
      %c0_29 = arith.constant 0 : index
      %28 = vector.load %arg8[%c0_28, %c0_29] : memref<32x128xf32, #tpu.memory_space<vmem>>, vector<32x128xf32>
      tpu.vector_store %arg8[%c0_28, %c0_29], %27 {strides = array<i32>} : memref<32x128xf32, #tpu.memory_space<vmem>>, vector<32x128xf32>,
    } else {
    }
    return
  }
  func.func @transform_0(%arg0: i32, %arg1: i32) -> (i32, i32) {
    %c0_i32 = arith.constant 0 : i32
    return %arg0, %arg1 : i32, i32
  }
  func.func @transform_1(%arg0: i32, %arg1: i32) -> (i32, i32) {
    %c0_i32 = arith.constant 0 : i32
    %c0_i32_0 = arith.constant 0 : i32
    return %c0_i32, %arg1 : i32, i32
  }
  func.func @transform_2(%arg0: i32, %arg1: i32) -> (i32, i32) {
    %c1_i32 = arith.constant 1 : i32
    %c0_i32 = arith.constant 0 : i32
    return %c1_i32, %arg1 : i32, i32
  }
  func.func @transform_3(%arg0: i32, %arg1: i32) -> (i32, i32) {
    %c0_i32 = arith.constant 0 : i32
    %c0_i32_0 = arith.constant 0 : i32
    %c0_i32_1 = arith.constant 0 : i32
    return %c0_i32, %c0_i32_0 : i32, i32
  }
  func.func @transform_4(%arg0: i32, %arg1: i32) -> (i32, i32) {
    %c0_i32 = arith.constant 0 : i32
    %c0_i32_0 = arith.constant 0 : i32
    %c0_i32_1 = arith.constant 0 : i32
    return %c0_i32, %c0_i32_0 : i32, i32
  }
  func.func @transform_5(%arg0: i32, %arg1: i32) -> (i32, i32) {
    %c0_i32 = arith.constant 0 : i32
    %c0_i32_0 = arith.constant 0 : i32
    return %arg0, %c0_i32 : i32, i32
  }
  func.func @transform_6(%arg0: i32, %arg1: i32) -> (i32, i32) {
    %c0_i32 = arith.constant 0 : i32
    %c0_i32_0 = arith.constant 0 : i32
    return %arg0, %c0_i32 : i32, i32
  }
}

</mosaic_0001>

<bundles_post_ra>
// kernel: tpu_custom_call.1
= control target key start
LH: loop header
LB: loop body
LE: loop exit
PB: predicated region body
PF: predicated region fallthrough
CT: control target
= control target key end

     0   :  { %12 = vsyncpa [#allocation5], 0  ;;  %s834_s0 = inlined_call_operand.hbm [shape: f32[32,128], index: 0, kind: input, shape index: {}]   ;;  %s835_s1 = inlined_call_operand.hbm [shape: f32[256,128], index: 1, kind: input, shape index: {}]   ;;  %s836_s2 = inlined_call_operand.hbm [shape: f32[256,128], index: 2, kind: input, shape index: {}]   ;;  %s837_s3 = inlined_call_operand.vmem [shape: f32[1,128], index: 3, kind: input, shape index: {}]   ;;  %s838_s4 = inlined_call_operand.vmem [shape: f32[1,128], index: 4, kind: input, shape index: {}]   ;;  %s839_s5 = inlined_call_operand.hbm [shape: f32[32,128], index: 5, kind: output, shape index: {0}]   ;;  %s840_s6 = inlined_call_operand.hbm [shape: f32[32,128], index: 6, kind: output, shape index: {1}]  }
   0x1   :  { %13 = vsyncpa [#allocation8], 0 }
   0x2   :  { %14 = vsyncpa [#allocation6], 0 }
   0x3   :  { %15 = vsyncpa [#allocation12], 0  ;;  %s697_s21 = smov [#allocation7]   ;;  %s698_s23 = smov [#allocation4]  }
   0x4   :  { %s33_s22 = sshll.u32 %s697_s21, 4  ;;  %s21_s24 = sshll.u32 %s698_s23, 4  ;;  %s34_s22 = int_to_ptr.vmem [resolvable:$true] %s33_s22  ;;  %s739_s24 = int_to_ptr.vmem [resolvable:$true] %s21_s24 }
   0x5   :  { %s576_s27 = scalar_lea.hbm %s835_s1, 2048  ;;  %s578_s8 = scalar_lea.hbm %s835_s1, 4096 }
   0x6   :  { %p577_p0 = scmp.ne.s32.totalorder %s835_s1, %s576_s27  ;;  %p579_p1 = scmp.lt.u32.totalorder %s578_s8, %s576_s27 }
   0x7   :  { %p580_p2 = scmp.lt.u32.totalorder %s576_s27, %s835_s1 }
   0x9   :  { %p581_p3 = por %p580_p2, %p579_p1 }
   0xb   :  { %p582_p4 = pnand %p581_p3, %p577_p0 }
   0xd   :  { %585 = shalt.err (!%p582_p4)
}
   0xe   :  { %s586_s11 = scalar_lea.vmem %s34_s22, 2048  ;;  %p591_p6 = scmp.lt.s32.totalorder %s34_s22, %s34_s22 }
   0xf   :  { %p587_p5 = scmp.ne.s32.totalorder %s34_s22, %s586_s11  ;;  %p592_p7 = scmp.lt.s32.totalorder %s586_s11, %s586_s11 }
  0x11   :  { %p593_p8 = por %p592_p7, %p591_p6 }
  0x13   :  { %p594_p9 = pnand %p593_p8, %p587_p5 }
  0x15   :  { %597 = shalt.err (!%p594_p9)
}
  0x16   :  { %s699_s12 = smov 128   ;;  %s700_s13 = smov 8  }
  0x17   :  { %39 = dma.hbm_to_vmem [thread:$0]  %s835_s1, 2048, %s34_s22, [#allocation8], %s699_s12, %s699_s12, %s700_s13  }
  0x18   :  { %s598_s18 = scalar_lea.hbm %s834_s0, 512 }
  0x19   :  { %p599_p10 = scmp.ne.s32.totalorder %s834_s0, %s598_s18  ;;  %p602_p11 = scmp.lt.u32.totalorder %s598_s18, %s834_s0 }
  0x1b   :  { %p604_p12 = pnand %p602_p11, %p599_p10 }
  0x1d   :  { %607 = shalt.err (!%p604_p12)
}
  0x1e   :  { %s608_s25 = scalar_lea.vmem %s739_s24, 512  ;;  %p613_p0 = scmp.lt.s32.totalorder %s739_s24, %s739_s24 }
  0x1f   :  { %p609_p13 = scmp.ne.s32.totalorder %s739_s24, %s608_s25  ;;  %p614_p1 = scmp.lt.s32.totalorder %s608_s25, %s608_s25 }
  0x21   :  { %p615_p2 = por %p614_p1, %p613_p0 }
  0x23   :  { %p616_p3 = pnand %p615_p2, %p609_p13 }
  0x25   :  { %619 = shalt.err (!%p616_p3)
}
  0x26   :  { %27 = dma.hbm_to_vmem [thread:$0]  %s834_s0, 512, %s739_s24, [#allocation5], %s699_s12, %s699_s12, %s700_s13  }
  0x27   :  { %s45_s28 = scalar_lea.hbm %s836_s2, 2048  ;;  %s701_s29 = smov [#allocation9]  }
  0x28   :  { %s46_s30 = sshll.u32 %s701_s29, 4  ;;  %s644_s9 = scalar_lea.hbm %s836_s2, 4096  ;;  %s47_s30 = int_to_ptr.vmem [resolvable:$true] %s46_s30 }
  0x29   :  { %p621_p4 = scmp.ne.s32.totalorder %s45_s28, %s644_s9  ;;  %p623_p5 = scmp.lt.u32.totalorder %s45_s28, %s836_s2 }
  0x2a   :  { %p624_p6 = scmp.lt.u32.totalorder %s644_s9, %s644_s9  ;;  %p626_p8 = scmp.lt.u32.totalorder %s644_s9, %s45_s28 }
  0x2c   :  { %p625_p7 = por %p624_p6, %p623_p5 }
  0x2e   :  { %p627_p9 = por %p626_p8, %p625_p7 }
  0x30   :  { %p628_p10 = pnand %p627_p9, %p621_p4 }
  0x32   :  { %631 = shalt.err (!%p628_p10)
}
  0x33   :  { %s632_s0 = scalar_lea.vmem %s47_s30, 2048  ;;  %p637_p12 = scmp.lt.s32.totalorder %s47_s30, %s47_s30 }
  0x34   :  { %p633_p11 = scmp.ne.s32.totalorder %s47_s30, %s632_s0  ;;  %p638_p13 = scmp.lt.s32.totalorder %s632_s0, %s632_s0 }
  0x36   :  { %p639_p0 = por %p638_p13, %p637_p12 }
  0x38   :  { %p640_p1 = pnand %p639_p0, %p633_p11 }
  0x3a   :  { %643 = shalt.err (!%p640_p1)
}
  0x3b   :  { %52 = dma.hbm_to_vmem [thread:$0]  %s45_s28, 2048, %s47_s30, [#allocation8], %s699_s12, %s699_s12, %s700_s13  }
  0x3c   :  { %689 = dma.done.wait [#allocation5], 512  }
  0x3d   :  { %690 = vsyncadd [#allocation5], 4294966784 }
  0x3e   :  { %691 = dma.done.wait [#allocation8], 4096  }
  0x3f   :  { %692 = vsyncadd [#allocation8], 4294963200  ;;  %v86_v0 = vld [vmem:[#allocation7] sm:$0xff]  ;;  %v87_v1 = vld [vmem:[#allocation7 + $0x8] sm:$0xff]  ;;  %s702_s16 = smov [#allocation11]  }
  0x40   :  { %v199_v2 = vld [vmem:[#allocation9] sm:$0xff]  ;;  %v505_v3 = vpack.c.bf16 %v87_v1, %v86_v0  ;;  %v200_v4 = vld [vmem:[#allocation9 + $0x8] sm:$0xff]  ;;  %v88_v5 = vld [vmem:[#allocation7 + $0x10] sm:$0xff]  ;;  %s370_s17 = sshll.u32 %s702_s16, 4  ;;  %s371_s17 = int_to_ptr.vmem [resolvable:$true] %s370_s17 }
  0x41   :  { %v89_v6 = vld [vmem:[#allocation7 + $0x18] sm:$0xff]  ;;  %v537_v7 = vpack.c.bf16 %v200_v4, %v199_v2  ;;  %v201_v9 = vld [vmem:[#allocation9 + $0x10] sm:$0xff]  ;;  %v90_v12 = vld [vmem:[#allocation7 + $0x20] sm:$0xff]  ;;  %s645_s18 = scalar_lea.vmem %s371_s17, 512  ;;  %p650_p3 = scmp.lt.s32.totalorder %s371_s17, %s371_s17 }
  0x42   :  { %v509_v8 = vpack.c.bf16 %v89_v6, %v88_v5  ;;  %v202_v10 = vld [vmem:[#allocation9 + $0x18] sm:$0xff]  ;;  %506 = vmatprep.subr.bf16.mxu0 %v505_v3  ;;  %v91_v13 = vld [vmem:[#allocation7 + $0x28] sm:$0xff]  ;;  %v203_v14 = vld [vmem:[#allocation9 + $0x20] sm:$0xff]  ;;  %p646_p2 = scmp.ne.s32.totalorder %s371_s17, %s645_s18  ;;  %p651_p4 = scmp.lt.s32.totalorder %s645_s18, %s645_s18 }
  0x43   :  { %v541_v11 = vpack.c.bf16 %v202_v10, %v201_v9  ;;  %508 = vmatpush3.bf16.xpose.msra.mxu0 %v505_v3  ;;  %538 = vmatprep.subr.bf16.mxu1 %v537_v7  ;;  %v204_v15 = vld [vmem:[#allocation9 + $0x28] sm:$0xff]  ;;  %v513_v16 = vpack.c.bf16 %v91_v13, %v90_v12  ;;  %v78_v18 = vld [vmem:[#allocation4] sm:$0xff]  ;;  %v92_v19 = vld [vmem:[#allocation7 + $0x30] sm:$0xff] }
  0x44   :  { %540 = vmatpush3.bf16.xpose.msra.mxu1 %v537_v7  ;;  %510 = vmatprep.subr.bf16.mxu0 %v509_v8  ;;  %v545_v17 = vpack.c.bf16 %v204_v15, %v203_v14  ;;  %v93_v20 = vld [vmem:[#allocation7 + $0x38] sm:$0xff]  ;;  %v205_v21 = vld [vmem:[#allocation9 + $0x30] sm:$0xff]  ;;  %v94_v25 = vld [vmem:[#allocation7 + $0x40] sm:$0xff]  ;;  %p652_p5 = por %p651_p4, %p650_p3 }
  0x45   :  { %542 = vmatprep.subr.bf16.mxu1 %v541_v11  ;;  %461 = vmatprep.mubr.f32.mxu0 %v78_v18  ;;  %v206_v22 = vld [vmem:[#allocation9 + $0x38] sm:$0xff]  ;;  %v517_v23 = vpack.c.bf16 %v93_v20, %v92_v19  ;;  %v95_v26 = vld [vmem:[#allocation7 + $0x48] sm:$0xff]  ;;  %v207_v27 = vld [vmem:[#allocation9 + $0x40] sm:$0xff] }
  0x46   :  { %499 = vmatprep.mubr.f32.mxu1 %v78_v18  ;;  %v549_v24 = vpack.c.bf16 %v206_v22, %v205_v21  ;;  %v208_v28 = vld [vmem:[#allocation9 + $0x48] sm:$0xff]  ;;  %v521_v29 = vpack.c.bf16 %v95_v26, %v94_v25  ;;  %v96_v31 = vld [vmem:[#allocation7 + $0x50] sm:$0xff]  ;;  %v97_v32 = vld [vmem:[#allocation7 + $0x58] sm:$0xff]  ;;  %p653_p6 = pnand %p652_p5, %p646_p2 }
  0x47   :  { %v553_v30 = vpack.c.bf16 %v208_v28, %v207_v27  ;;  %v209_v33 = vld [vmem:[#allocation9 + $0x50] sm:$0xff]  ;;  %v210_v34 = vld [vmem:[#allocation9 + $0x58] sm:$0xff]  ;;  %v525_v35 = vpack.c.bf16 %v97_v32, %v96_v31  ;;  %v98_v37 = vld [vmem:[#allocation7 + $0x60] sm:$0xff] }
  0x48   :  { %v557_v36 = vpack.c.bf16 %v210_v34, %v209_v33  ;;  %v99_v38 = vld [vmem:[#allocation7 + $0x68] sm:$0xff]  ;;  %v211_v39 = vld [vmem:[#allocation9 + $0x60] sm:$0xff]  ;;  %v100_v43 = vld [vmem:[#allocation7 + $0x70] sm:$0xff] }
  0x49   :  { %v212_v40 = vld [vmem:[#allocation9 + $0x68] sm:$0xff]  ;;  %v529_v41 = vpack.c.bf16 %v99_v38, %v98_v37  ;;  %v101_v44 = vld [vmem:[#allocation7 + $0x78] sm:$0xff]  ;;  %v213_v45 = vld [vmem:[#allocation9 + $0x70] sm:$0xff] }
  0x4a   :  { %v561_v42 = vpack.c.bf16 %v212_v40, %v211_v39  ;;  %v214_v46 = vld [vmem:[#allocation9 + $0x78] sm:$0xff]  ;;  %v533_v47 = vpack.c.bf16 %v101_v44, %v100_v43  ;;  %v79_v49 = vld [vmem:[#allocation4 + $0x8] sm:$0xff]  ;;  %v80_v50 = vld [vmem:[#allocation4 + $0x10] sm:$0xff] }
  0x4b   :  { %512 = vmatpush3.bf16.xpose.msra.mxu0 %v509_v8  ;;  %v565_v48 = vpack.c.bf16 %v214_v46, %v213_v45  ;;  %v81_v51 = vld [vmem:[#allocation4 + $0x18] sm:$0xff]  ;;  %v387_v52 = vld [vmem:[%s837_s3] ss:$0 sm:$0xff]  ;;  %s703_s3 = smov [#allocation10]  }
  0x4c   :  { %544 = vmatpush3.bf16.xpose.msra.mxu1 %v541_v11  ;;  %514 = vmatprep.subr.bf16.mxu0 %v513_v16  ;;  %v388_v53 = vld [vmem:[%s838_s4] ss:$0 sm:$0xff]  ;;  %s358_s4 = sshll.u32 %s703_s3, 4  ;;  %s797_s4 = int_to_ptr.vmem [resolvable:$true] %s358_s4 }
  0x4d   :  { %546 = vmatprep.subr.bf16.mxu1 %v545_v17 }
  0x53   :  { %516 = vmatpush3.bf16.xpose.msra.mxu0 %v513_v16 }
  0x54   :  { %548 = vmatpush3.bf16.xpose.msra.mxu1 %v545_v17  ;;  %518 = vmatprep.subr.bf16.mxu0 %v517_v23 }
  0x55   :  { %550 = vmatprep.subr.bf16.mxu1 %v549_v24 }
  0x5b   :  { %520 = vmatpush3.bf16.xpose.msra.mxu0 %v517_v23 }
  0x5c   :  { %552 = vmatpush3.bf16.xpose.msra.mxu1 %v549_v24  ;;  %522 = vmatprep.subr.bf16.mxu0 %v521_v29 }
  0x5d   :  { %554 = vmatprep.subr.bf16.mxu1 %v553_v30 }
  0x63   :  { %524 = vmatpush3.bf16.xpose.msra.mxu0 %v521_v29 }
  0x64   :  { %556 = vmatpush3.bf16.xpose.msra.mxu1 %v553_v30  ;;  %526 = vmatprep.subr.bf16.mxu0 %v525_v35 }
  0x65   :  { %558 = vmatprep.subr.bf16.mxu1 %v557_v36 }
  0x6b   :  { %528 = vmatpush3.bf16.xpose.msra.mxu0 %v525_v35 }
  0x6c   :  { %560 = vmatpush3.bf16.xpose.msra.mxu1 %v557_v36  ;;  %530 = vmatprep.subr.bf16.mxu0 %v529_v41 }
  0x6d   :  { %562 = vmatprep.subr.bf16.mxu1 %v561_v42 }
  0x73   :  { %532 = vmatpush3.bf16.xpose.msra.mxu0 %v529_v41 }
  0x74   :  { %564 = vmatpush3.bf16.xpose.msra.mxu1 %v561_v42  ;;  %534 = vmatprep.subr.bf16.mxu0 %v533_v47 }
  0x75   :  { %566 = vmatprep.subr.bf16.mxu1 %v565_v48 }
  0x7b   :  { %536 = vmatpush3.bf16.xpose.msra.mxu0 %v533_v47 }
  0x7c   :  { %568 = vmatpush3.bf16.xpose.msra.mxu1 %v565_v48 }
  0x82   :  { %462 = vmatmul.mubr.f32.vlgmr.msra.gmra.mrb[0].mxu0 %v79_v49 }
  0x83   :  { %500 = vmatmul.mubr.f32.vlgmr.msra.gmra.mrb[0].mxu1 %v79_v49  ;;  %464 = vmatprep.mubr.f32.mxu0 %v80_v50 }
  0x84   :  { %502 = vmatprep.mubr.f32.mxu1 %v80_v50 }
  0x86   :  { %465 = vmatmul.mubr.f32.gmra.mrb[2].mxu0 %v81_v51 }
  0x87   :  { %503 = vmatmul.mubr.f32.gmra.mrb[2].mxu1 %v81_v51 }
 0x155   :  { %v463_v54 = vpop.f32.mrb[0].mxu0 }
 0x156   :  { %v323_v55 = vadd.f32 %v463_v54, %v387_v52  ;;  %v168_v56 = vpop.f32.mrb[1].mxu0  ;;  %v501_v57 = vpop.f32.mrb[0].mxu1 }
 0x157   :  { %v322_v58 = vadd.f32 %v387_v52, %v168_v56  ;;  %v346_v59 = vadd.f32 %v501_v57, %v388_v53  ;;  %v281_v60 = vpop.f32.mrb[1].mxu1 }
 0x158   :  { %v327_v61 = vmul.f32 0.088388346, %v323_v55  ;;  %v345_v62 = vadd.f32 %v388_v53, %v281_v60 }
 0x159   :  { %v326_v63 = vmul.f32 0.088388346, %v322_v58  ;;  %350 = vst [vmem:[#allocation11 + $0x8] sm:$0xff] %v346_v59  ;;  %v466_v0 = vpop.f32.mrb[2].mxu0 }
 0x15a   :  { %331 = vst [vmem:[#allocation10 + $0x8] sm:$0xff] %v327_v61  ;;  %349 = vst [vmem:[#allocation11] sm:$0xff] %v345_v62  ;;  %v325_v1 = vadd.f32 %v466_v0, %v387_v52  ;;  %v178_v2 = vpop.f32.mrb[3].mxu0  ;;  %v504_v3 = vpop.f32.mrb[2].mxu1 }
 0x15b   :  { %330 = vst [vmem:[#allocation10] sm:$0xff] %v326_v63  ;;  %v324_v4 = vadd.f32 %v387_v52, %v178_v2  ;;  %v348_v5 = vadd.f32 %v504_v3, %v388_v53  ;;  %v291_v6 = vpop.f32.mrb[3].mxu1 }
 0x15c   :  { %v329_v7 = vmul.f32 0.088388346, %v325_v1  ;;  %v347_v8 = vadd.f32 %v388_v53, %v291_v6 }
 0x15d   :  { %v328_v9 = vmul.f32 0.088388346, %v324_v4  ;;  %352 = vst [vmem:[#allocation11 + $0x18] sm:$0xff] %v348_v5 }
 0x15e   :  { %333 = vst [vmem:[#allocation10 + $0x18] sm:$0xff] %v329_v7  ;;  %351 = vst [vmem:[#allocation11 + $0x10] sm:$0xff] %v347_v8 }
 0x15f   :  { %332 = vst [vmem:[#allocation10 + $0x10] sm:$0xff] %v328_v9 }
 0x160   :  { %656 = shalt.err (!%p653_p6)
}
 0x161   :  { %s657_s21 = scalar_lea.hbm %s840_s6, 512 }
 0x162   :  { %p658_p7 = scmp.ne.s32.totalorder %s840_s6, %s657_s21  ;;  %p661_p8 = scmp.lt.u32.totalorder %s657_s21, %s840_s6 }
 0x164   :  { %p663_p9 = pnand %p661_p8, %p658_p7 }
 0x166   :  { %666 = shalt.err (!%p663_p9)
}
 0x167   :  { %376 = dma.vmem_to_hbm [thread:$0]  %s371_s17, 512, %s840_s6, [#allocation12], %s699_s12, %s699_s12, %s700_s13  }
 0x168   :  { %s667_s28 = scalar_lea.vmem %s797_s4, 512  ;;  %p672_p11 = scmp.lt.s32.totalorder %s797_s4, %s797_s4 }
 0x169   :  { %p668_p10 = scmp.ne.s32.totalorder %s797_s4, %s667_s28  ;;  %p673_p12 = scmp.lt.s32.totalorder %s667_s28, %s667_s28 }
 0x16b   :  { %p674_p13 = por %p673_p12, %p672_p11 }
 0x16d   :  { %p675_p0 = pnand %p674_p13, %p668_p10 }
 0x16f   :  { %678 = shalt.err (!%p675_p0)
}
 0x170   :  { %s679_s7 = scalar_lea.hbm %s839_s5, 512 }
 0x171   :  { %p680_p1 = scmp.ne.s32.totalorder %s839_s5, %s679_s7  ;;  %p683_p2 = scmp.lt.u32.totalorder %s679_s7, %s839_s5 }
 0x173   :  { %p685_p3 = pnand %p683_p2, %p680_p1 }
 0x175   :  { %688 = shalt.err (!%p685_p3)
}
 0x176   :  { %364 = dma.vmem_to_hbm [thread:$0]  %s797_s4, 512, %s839_s5, [#allocation6], %s699_s12, %s699_s12, %s700_s13  }
 0x177   :  { %693 = dma.done.wait [#allocation6], 512  }
 0x178   :  { %694 = vsyncadd [#allocation6], 4294966784 }
 0x179   :  { %695 = dma.done.wait [#allocation12], 512  }
 0x17a   :  { %696 = vsyncadd [#allocation12], 4294966784 }
 0x17b   :  { %383 = vsyncpa [#allocation5], 1 }
 0x17c   :  { %384 = vsyncpa [#allocation8], 1 }
 0x17d   :  { %385 = vsyncpa [#allocation6], 1 }
 0x17e   :  { %386 = vsyncpa [#allocation12], 1 }

</bundles_post_ra>
